<compile_context>
chip_gen: v5e
topology: v5e:2x2
jax: 0.10.0
libtpu: 0.0.40
codegen_flags: <defaults>
</compile_context>

<pallas_src>
import functools

import jax
import jax.numpy as jnp
from jax.experimental import pallas as pl
from jax.experimental.pallas import tpu as pltpu

EPSILON = 1e-4

# Keep the double-buffered block working set comfortably inside the smallest
# targeted scoped-VMEM budget (v7x: 32 MiB scoped of 64 MiB physical).
_VMEM_BLOCK_BUDGET = 24 * 1024 * 1024
_VMEM_LIMIT_BYTES = 40 * 1024 * 1024


def _round_up(x, m):
    return -(-x // m) * m


def _pick_hw_tile(hw, rows_per_buffer, itemsize):
    """Largest lane tile (multiple of 128) whose pipelined footprint fits VMEM.

    rows_per_buffer: total sublane-padded rows resident per pipeline buffer
    (input blocks + output block). Each block is double-buffered by Pallas.
    """
    if hw % 128 != 0:
        # Non-lane-aligned spatial extent: use the full-dim escape hatch
        # (block == full array dim). Correct but lane-padded; callers with such
        # shapes should pad H*W to a multiple of 128 upstream for peak BW.
        return hw
    bytes_per_lane = 2 * rows_per_buffer * itemsize  # x2: double buffering
    t = (_VMEM_BLOCK_BUDGET // bytes_per_lane) // 128 * 128
    return int(max(128, min(t, hw)))


def _we_concat_equal_kernel(w_ref, x0_ref, x1_ref, o_ref):
    # w_ref: SMEM (3,). x0_ref / x1_ref: VMEM (C, T). o_ref: VMEM (2, C, T).
    inv = 1.0 / (w_ref[0] + w_ref[1] + w_ref[2] + EPSILON)
    o_ref[0] = (w_ref[0] * inv) * x0_ref[...]  # half 0: full, aligned slab store
    o_ref[1] = (w_ref[1] * inv) * x1_ref[...]  # half 1: full, aligned slab store


def _we_concat_general_kernel(c0, w_ref, x0_ref, x1_ref, o_ref):
    # Fallback for c0 != c1. o_ref: VMEM (c0 + c1, T); the second store starts
    # at channel offset c0 (only sublane-misaligned when c0 % 8 != 0).
    inv = 1.0 / (w_ref[0] + w_ref[1] + w_ref[2] + EPSILON)
    o_ref[:c0, :] = (w_ref[0] * inv) * x0_ref[...]
    o_ref[c0:, :] = (w_ref[1] * inv) * x1_ref[...]


def _we_concat_equal(x0, x1, w):
    n, c, h, wd = x0.shape
    hw = h * wd
    itemsize = jnp.dtype(x0.dtype).itemsize
    # Resident rows per buffer: x0 (c) + x1 (c) + out (2 slabs of c), padded to 8.
    rows = 4 * _round_up(c, 8)
    t_hw = _pick_hw_tile(hw, rows, itemsize)
    grid = (n, pl.cdiv(hw, t_hw))

    x0_r = x0.reshape(n, c, hw)
    x1_r = x1.reshape(n, c, hw)

    out = pl.pallas_call(
        _we_concat_equal_kernel,
        out_shape=jax.ShapeDtypeStruct((n, 2, c, hw), x0.dtype),
        grid_spec=pltpu.PrefetchScalarGridSpec(
            num_scalar_prefetch=0,
            grid=grid,
            in_specs=[
                pl.BlockSpec(memory_space=pltpu.SMEM),                          # w (3,)
                pl.BlockSpec((pl.Squeezed(), c, t_hw), lambda b, t: (b, 0, t)),  # x0
                pl.BlockSpec((pl.Squeezed(), c, t_hw), lambda b, t: (b, 0, t)),  # x1
            ],
            out_specs=pl.BlockSpec((pl.Squeezed(), 2, c, t_hw),
                                   lambda b, t: (b, 0, 0, t)),
        ),
        compiler_params=pltpu.CompilerParams(
            dimension_semantics=("parallel", "parallel"),
            vmem_limit_bytes=_VMEM_LIMIT_BYTES),
    )(w, x0_r, x1_r)

    return out.reshape(n, 2 * c, h, wd)


def _we_concat_general(x0, x1, w):
    n, c0, h, wd = x0.shape
    _, c1, _, _ = x1.shape
    hw = h * wd
    itemsize = jnp.dtype(x0.dtype).itemsize
    rows = _round_up(c0, 8) + _round_up(c1, 8) + _round_up(c0 + c1, 8)
    t_hw = _pick_hw_tile(hw, rows, itemsize)
    grid = (n, pl.cdiv(hw, t_hw))

    x0_r = x0.reshape(n, c0, hw)
    x1_r = x1.reshape(n, c1, hw)

    out = pl.pallas_call(
        functools.partial(_we_concat_general_kernel, c0),
        out_shape=jax.ShapeDtypeStruct((n, c0 + c1, hw), x0.dtype),
        grid_spec=pltpu.PrefetchScalarGridSpec(
            num_scalar_prefetch=0,
            grid=grid,
            in_specs=[
                pl.BlockSpec(memory_space=pltpu.SMEM),
                pl.BlockSpec((pl.Squeezed(), c0, t_hw), lambda b, t: (b, 0, t)),
                pl.BlockSpec((pl.Squeezed(), c1, t_hw), lambda b, t: (b, 0, t)),
            ],
            out_specs=pl.BlockSpec((pl.Squeezed(), c0 + c1, t_hw),
                                   lambda b, t: (b, 0, t)),
        ),
        compiler_params=pltpu.CompilerParams(
            dimension_semantics=("parallel", "parallel"),
            vmem_limit_bytes=_VMEM_LIMIT_BYTES),
    )(w, x0_r, x1_r)

    return out.reshape(n, c0 + c1, h, wd)


def we_concat(x0, x1, w):
    """x0, x1: NCHW arrays (same N, H, W); w: (3,) learnable weights."""
    # TODO(synk): only the default concat dimension (d=1, channels) is implemented.
    assert x0.shape[0] == x1.shape[0] and x0.shape[2:] == x1.shape[2:]
    if x0.shape[1] == x1.shape[1]:
        return _we_concat_equal(x0, x1, w)
    return _we_concat_general(x0, x1, w)


def we_concat_ref(x0, x1, w):
    weight = w / (jnp.sum(w) + EPSILON)
    return jnp.concatenate([weight[0] * x0, weight[1] * x1], axis=1)


if __name__ == "__main__":
    key = jax.random.PRNGKey(0)
    k0, k1, k2 = jax.random.split(key, 3)

    # Small NCHW inputs consistent with the module's forward (channel concat).
    x0 = jax.random.normal(k0, (2, 4, 16, 16), dtype=jnp.float32)
    x1 = jax.random.normal(k1, (2, 4, 16, 16), dtype=jnp.float32)
    # Parameter init matches nn.Parameter(torch.ones(3)).
    w = jnp.ones((3,), dtype=jnp.float32)

    out = we_concat(x0, x1, w)
    jax.block_until_ready(out)
    ref = we_concat_ref(x0, x1, w)
    assert out.shape == (2, 8, 16, 16)
    assert jnp.allclose(out, ref, atol=1e-6, rtol=1e-6)

    # Also exercise the unequal-channel fallback path.
    x2 = jax.random.normal(k2, (2, 8, 16, 16), dtype=jnp.float32)
    out2 = we_concat(x0, x2, w)
    jax.block_until_ready(out2)
    ref2 = we_concat_ref(x0, x2, w)
    assert out2.shape == (2, 12, 16, 16)
    assert jnp.allclose(out2, ref2, atol=1e-6, rtol=1e-6)

    print("KERNEL_OK")
</pallas_src>

<mosaic_0001>
module attributes {stable_mosaic.version = 11 : i64} {
  func.func @_we_concat_equal_kernel(%arg0: i32, %arg1: i32, %arg2: memref<3xf32, #tpu.memory_space<smem>>, %arg3: memref<1x4x256xf32, #tpu.memory_space<vmem>>, %arg4: memref<1x4x256xf32, #tpu.memory_space<vmem>>, %arg5: memref<1x2x4x256xf32, #tpu.memory_space<vmem>>) attributes {dimension_semantics = [#tpu.dimension_semantics<parallel>, #tpu.dimension_semantics<parallel>], iteration_bounds = array<i64: 2, 1>, scalar_prefetch = 0 : i64, scratch_operands = 0 : i64, tpu.core_type = #tpu.core_type<tc>, window_params = [{transform_indices = @transform_0, window_bounds = array<i64: 3>}, {transform_indices = @transform_1, window_bounds = array<i64: 1, 4, 256>}, {transform_indices = @transform_2, window_bounds = array<i64: 1, 4, 256>}, {transform_indices = @transform_3, window_bounds = array<i64: 1, 2, 4, 256>}]} {
    %c0 = arith.constant 0 : index
    %0 = memref.load %arg2[%c0] : memref<3xf32, #tpu.memory_space<smem>>
    %c1 = arith.constant 1 : index
    %1 = memref.load %arg2[%c1] : memref<3xf32, #tpu.memory_space<smem>>
    %2 = arith.addf %0, %1 : f32
    %c2 = arith.constant 2 : index
    %3 = memref.load %arg2[%c2] : memref<3xf32, #tpu.memory_space<smem>>
    %4 = arith.addf %2, %3 : f32
    %cst = arith.constant 9.99999974E-5 : f32
    %5 = arith.addf %4, %cst : f32
    %cst_0 = arith.constant 1.000000e+00 : f32
    %6 = arith.divf %cst_0, %5 : f32
    %c0_1 = arith.constant 0 : index
    %7 = memref.load %arg2[%c0_1] : memref<3xf32, #tpu.memory_space<smem>>
    %8 = arith.mulf %7, %6 : f32
    %c0_2 = arith.constant 0 : index
    %c0_3 = arith.constant 0 : index
    %c0_4 = arith.constant 0 : index
    %9 = vector.load %arg3[%c0_2, %c0_3, %c0_4] : memref<1x4x256xf32, #tpu.memory_space<vmem>>, vector<1x4x256xf32>
    %10 = vector.shape_cast %9 : vector<1x4x256xf32> to vector<4x256xf32>
    %11 = vector.broadcast %8 : f32 to vector<4x256xf32>
    %12 = arith.mulf %11, %10 : vector<4x256xf32>
    %c0_5 = arith.constant 0 : index
    %c0_6 = arith.constant 0 : index
    %c0_7 = arith.constant 0 : index
    %c0_8 = arith.constant 0 : index
    %13 = vector.load %arg5[%c0_5, %c0_6, %c0_7, %c0_8] : memref<1x2x4x256xf32, #tpu.memory_space<vmem>>, vector<1x1x4x256xf32>
    %14 = vector.shape_cast %13 : vector<1x1x4x256xf32> to vector<4x256xf32>
    %15 = vector.shape_cast %12 : vector<4x256xf32> to vector<1x1x4x256xf32>
    tpu.vector_store %arg5[%c0_5, %c0_6, %c0_7, %c0_8], %15 {strides = array<i32>} : memref<1x2x4x256xf32, #tpu.memory_space<vmem>>, vector<1x1x4x256xf32>,
    %c1_9 = arith.constant 1 : index
    %16 = memref.load %arg2[%c1_9] : memref<3xf32, #tpu.memory_space<smem>>
    %17 = arith.mulf %16, %6 : f32
    %c0_10 = arith.constant 0 : index
    %c0_11 = arith.constant 0 : index
    %c0_12 = arith.constant 0 : index
    %18 = vector.load %arg4[%c0_10, %c0_11, %c0_12] : memref<1x4x256xf32, #tpu.memory_space<vmem>>, vector<1x4x256xf32>
    %19 = vector.shape_cast %18 : vector<1x4x256xf32> to vector<4x256xf32>
    %20 = vector.broadcast %17 : f32 to vector<4x256xf32>
    %21 = arith.mulf %20, %19 : vector<4x256xf32>
    %c0_13 = arith.constant 0 : index
    %c1_14 = arith.constant 1 : index
    %c0_15 = arith.constant 0 : index
    %c0_16 = arith.constant 0 : index
    %22 = vector.load %arg5[%c0_13, %c1_14, %c0_15, %c0_16] : memref<1x2x4x256xf32, #tpu.memory_space<vmem>>, vector<1x1x4x256xf32>
    %23 = vector.shape_cast %22 : vector<1x1x4x256xf32> to vector<4x256xf32>
    %24 = vector.shape_cast %21 : vector<4x256xf32> to vector<1x1x4x256xf32>
    tpu.vector_store %arg5[%c0_13, %c1_14, %c0_15, %c0_16], %24 {strides = array<i32>} : memref<1x2x4x256xf32, #tpu.memory_space<vmem>>, vector<1x1x4x256xf32>,
    return
  }
  func.func @transform_0(%arg0: i32, %arg1: i32) -> i32 {
    %c0_i32 = arith.constant 0 : i32
    %c0_i32_0 = arith.constant 0 : i32
    return %c0_i32 : i32
  }
  func.func @transform_1(%arg0: i32, %arg1: i32) -> (i32, i32, i32) {
    %c0_i32 = arith.constant 0 : i32
    %c0_i32_0 = arith.constant 0 : i32
    return %arg0, %c0_i32, %arg1 : i32, i32, i32
  }
  func.func @transform_2(%arg0: i32, %arg1: i32) -> (i32, i32, i32) {
    %c0_i32 = arith.constant 0 : i32
    %c0_i32_0 = arith.constant 0 : i32
    return %arg0, %c0_i32, %arg1 : i32, i32, i32
  }
  func.func @transform_3(%arg0: i32, %arg1: i32) -> (i32, i32, i32, i32) {
    %c0_i32 = arith.constant 0 : i32
    %c0_i32_0 = arith.constant 0 : i32
    %c0_i32_1 = arith.constant 0 : i32
    return %arg0, %c0_i32, %c0_i32_0, %arg1 : i32, i32, i32, i32
  }
}

</mosaic_0001>

<bundles_post_ra>
// kernel: tpu_custom_call.1
= control target key start
LH: loop header
LB: loop body
LE: loop exit
PB: predicated region body
PF: predicated region fallthrough
CT: control target
= control target key end

     0   :  { %s915_s0 = inlined_call_operand.hbm [shape: f32[3], index: 0, kind: input, shape index: {}]   ;;  %s916_s1 = inlined_call_operand.hbm [shape: f32[2,4,256], index: 1, kind: input, shape index: {}]   ;;  %s917_s2 = inlined_call_operand.hbm [shape: f32[2,4,256], index: 2, kind: input, shape index: {}]   ;;  %s918_s3 = inlined_call_operand.hbm [shape: f32[2,2,4,256], index: 3, kind: output, shape index: {}]  }
   0x1   :  { %920 = sst [smem:[#allocation15_spill]] %s915_s0 }
   0x2   :  { %8 = vsyncpa [#allocation5], 0 }
   0x3   :  { %9 = vsyncpa [#allocation3], 0 }
   0x4   :  { %11 = vsyncpa [#allocation3 + $0x1], 0 }
   0x5   :  { %12 = vsyncpa [#allocation8], 0 }
   0x6   :  { %14 = vsyncpa [#allocation8 + $0x1], 0 }
   0x7   :  { %15 = vsyncpa [#allocation4], 0 }
   0x8   :  { %17 = vsyncpa [#allocation4 + $0x1], 0  ;;  %s747_s12 = smov 0   ;;  %s749_s13 = smov 0  }
   0x9   :  { %s751_s14 = smov 0   ;;  %s753_s15 = smov 0  }
   0xa   :  { %s755_s16 = smov 0   ;;  %s757_s17 = smov 0  }
   0xb LB: > { %s445_s18 = sadd.s32 4294967295, %s722_s17   ;;  %s446_s19 = sadd.s32 4294967294, %s722_s17   ;;  %s722_s17 = sphi %s757_s17, %s23_s17   ;;  %s718_s16 = sphi %s755_s16, %s935_s16   ;;  %s714_s15 = sphi %s753_s15, %s934_s15   ;;  %s710_s14 = sphi %s751_s14, %s933_s14   ;;  %s706_s13 = sphi %s749_s13, %s932_s13   ;;  %s702_s12 = sphi %s747_s12, %s931_s12  }
   0xc   : > { %p78_p0 = scmp.ne.s32.totalorder %s706_s13, %s702_s12  ;;  %p781_p1 = scmp.eq.s32.totalorder %s445_s18, 0 }
   0xd   : > { %p785_p2 = scmp.eq.s32.totalorder %s445_s18, 1  ;;  %p138_p3 = scmp.eq.s32.totalorder %s446_s19, 1 }
   0xe   : > { %p791_p4 = por %p781_p1, %p78_p0  ;;  %p447_p5 = scmp.ge.s32.totalorder %s722_s17, 1 }
   0xf   : > { %p796_p6 = por %p138_p3, %p78_p0  ;;  %p145_p7 = scmp.lt.s32.totalorder %s722_s17, 3 }
  0x10   : > { %s925_s0 = sld [smem:[#allocation15_spill]]  ;;  %s35_s28 = sadd.s32 1, %s718_s16 }
  0x11   : > { %p804_p8 = pnand %p447_p5, %p145_p7  ;;  %s65_s29 = sadd.s32 1, %s710_s14 }
  0x12   : > { %p37_p12 = scmp.ge.s32.totalorder %s35_s28, 2  ;;  %s724_s30 = smov [#allocation2]  }
  0x13   : > { %p485_p10 = pneg %p804_p8  ;;  %p72_p13 = scmp.ne.s32.totalorder %s710_s14, %s706_s13 }
  0x14   : > { %s937_s28 = smov (%p37_p12, %s35_s28), 0  ;;  %p73_p0 = scmp.eq.s32.totalorder %s722_s17, 0 }
  0x15   : > { %p486_p11 = pnand %p485_p10, %p781_p1  ;;  %927 = sst [smem:[#allocation14_spill]] %s937_s28 }
  0x16   : > { %s157_s26 = sshll.u32 %s925_s0, 4  ;;  %s60_s4 = ssub.s32 %s718_s16, %s937_s28  ;;  %s158_s26 = int_to_ptr.hbm [resolvable:$true] %s157_s26 }
  0x17   : > { %488 = dma.hbm_to_smem (!%p486_p11), %s158_s26, 16, %s724_s30, [#allocation5]  }
  0x18   : > { %p501_p3 = scmp.lt.s32.totalorder %s722_s17, 2  ;;  %p63_p5 = scmp.eq.s32.totalorder %s60_s4, 0 }
  0x19   : > { %p74_p7 = por %p73_p0, %p72_p13  ;;  %p825_p9 = por %p785_p2, %p72_p13 }
  0x1a   : > { %s168_s6 = sand.u32 1, %s710_s14   ;;  %s470_s9 = sshll.u32 %s718_s16, 3 }
  0x1b   : > { %s831_s7 = scalar_select %p63_p5, %s710_s14, %s65_s29  }
  0x1c   : > { %s450_s8 = sshll.u32 %s168_s6, 3  ;;  %s179_s18 = scalar_lea.hbm %s916_s1, %s470_s9 }
  0x1d   : > { %s172_s19 = scalar_lea.vmem [#allocation6], %s450_s8  ;;  %s181_s25 = sshll.u32 %s179_s18, 4  ;;  %s182_s25 = int_to_ptr.hbm [resolvable:$true] %s181_s25 }
  0x1e   : > { %s183_s24 = sshll.u32 %s172_s19, 4  ;;  %p490_p10 = pnand %p501_p3, %p74_p7  ;;  %s184_s24 = int_to_ptr.vmem [resolvable:$true] %s183_s24 }
  0x1f   : > { %s201_s30 = scalar_lea.hbm %s917_s2, %s470_s9  ;;  %s169_s4 = scalar_lea.sflag [#allocation3], %s168_s6 }
  0x20   : > { %492 = dma.hbm_to_vmem [thread:$0]  (!%p490_p10), %s182_s25, 128, %s184_s24, %s169_s4  }
  0x21   : > { %s203_s29 = sshll.u32 %s201_s30, 4  ;;  %s194_s0 = scalar_lea.vmem [#allocation7], %s450_s8  ;;  %s204_s29 = int_to_ptr.hbm [resolvable:$true] %s203_s29 }
  0x22   : > { %s205_s28 = sshll.u32 %s194_s0, 4  ;;  %s191_s10 = scalar_lea.sflag [#allocation8], %s168_s6  ;;  %s206_s28 = int_to_ptr.vmem [resolvable:$true] %s205_s28 }
  0x23   : > { %495 = dma.hbm_to_vmem [thread:$0]  (!%p490_p10), %s204_s29, 128, %s206_s28, %s191_s10  }
  0x24   : > { %214 = sbr.rel (%p804_p8) target bundleno = 141 (0x8d), region = 32 }
  0x29   : > { %685 = dma.done.wait (%p781_p1), [#allocation5], 16  }
  0x2a   : > { %687 = vsyncadd (%p781_p1), [#allocation5], 4294967280  ;;  %s849_s9 = sand.u32 1, %s706_s13  }
  0x2b   : > { %s458_s0 = sshll.u32 %s849_s9, 3  ;;  %s222_s8 = scalar_lea.sflag [#allocation3], %s849_s9 }
  0x2c   : > { %s853_s11 = scalar_lea.vmem [#allocation6], %s458_s0 }
  0x2d   : > { %689 = dma.done.wait (%p791_p4), %s222_s8, 128  }
  0x2e   : > { %691 = vsyncadd (%p791_p4), %s222_s8, 4294967168  ;;  %s232_s27 = scalar_lea.sflag [#allocation8], %s849_s9  ;;  %s860_s20 = scalar_lea.vmem [#allocation7], %s458_s0 }
  0x2f   : > { %693 = dma.done.wait (%p791_p4), %s232_s27, 128  }
  0x30   : > { %695 = vsyncadd (%p791_p4), %s232_s27, 4294967168 }
  0x31   : > { %241 = sfence }
  0x32   : > { %s866_s28 = sld [smem:[#allocation2]]  ;;  %s460_s22 = sshll.u32 %s849_s9, 4  ;;  %v291_v11 = vld [vmem:[%s853_s11] sm:$0xff]  ;;  %v297_v12 = vld [vmem:[%s860_s20] sm:$0xff] }
  0x33   : > { %s868_s6 = sld [smem:[#allocation2 + $0x1]]  ;;  %s472_s21 = sshll.u32 %s714_s15, 4 }
  0x34   : > { %s462_s18 = sld [smem:[#allocation2 + $0x2]]  ;;  %s316_s4 = scalar_lea.hbm %s918_s3, %s472_s21 }
  0x35   : > { %s264_s10 = scalar_lea.vmem [#allocation9], %s460_s22  ;;  %s303_s15 = scalar_lea.sflag [#allocation4], %s849_s9 }
  0x36   : > { %s317_s0 = sshll.u32 %s264_s10, 4  ;;  %s652_s20 = scalar_lea.hbm %s918_s3, 32  ;;  %s318_s0 = int_to_ptr.vmem [resolvable:$true] %s317_s0 }
  0x39   : > { %s270_s19 = sadd.f32 %s868_s6, %s866_s28 }
  0x3b   : > { %s272_s24 = sadd.f32 %s462_s18, %s270_s19  ;;  %s319_s18 = sshll.u32 %s316_s4, 4  ;;  %s320_s18 = int_to_ptr.hbm [resolvable:$true] %s319_s18 }
  0x3c   : > { %s646_s19 = sshra.s32 %s320_s18, 4  ;;  %s647_s19 = int_to_ptr.hbm [resolvable:$true] %s646_s19 }
  0x3d   : > { %s273_s25 = sadd.f32 0.0001, %s272_s24  ;;  %s648_s24 = scalar_lea.hbm %s647_s19, 16 }
  0x3e   : > { %p649_p1 = scmp.ne.s32.totalorder %s647_s19, %s648_s24  ;;  %p653_p8 = scmp.lt.s32.totalorder %s647_s19, %s918_s3 }
  0x3f   : > { %v274_v0 = vstv %s273_s25  ;;  %p654_p11 = scmp.lt.s32.totalorder %s652_s20, %s648_s24 }
  0x40   : > { %555 = vrcp.f32 %v274_v0  ;;  %v286_v3 = vand.u32 2147483648, %v274_v0  ;;  %vm280_vm0 = vweird.f32 %v274_v0  ;;  %v284_v5 = vand.u32 2147483647, %v274_v0  ;;  %p650_p2 = pnand %p649_p1, %p825_p9 }
  0x41   : > { %p655_p12 = por %p654_p11, %p653_p8 }
  0x42   : > { %v287_v7 = vor.u32 1.1754944e-38, %v286_v3  ;;  %vm285_vm3 = vcmp.eq.f32.partialorder %v284_v5, 8.507059e+37  ;;  %p651_p4 = pneg %p650_p2 }
  0x44   : > { %p656_p13 = pnand %p655_p12, %p651_p4 }
  0x46   : > { %v556_v1 = vpop.eup %555 }
  0x47   : > { %v276_v2 = vmul.f32 %v556_v1, %v274_v0  ;;  %vm281_vm1 = vweird.f32 %v556_v1 }
  0x48   : > { %vm282_vm2 = vmor %vm280_vm0, %vm281_vm1 }
  0x49   : > { %v277_v4 = vsub.f32 1.0, %v276_v2 }
  0x4b   : > { %v278_v6 = vmul.f32 %v556_v1, %v277_v4 }
  0x4d   : > { %v279_v8 = vadd.f32 %v556_v1, %v278_v6 }
  0x4f   : > { %v283_v9 = vsel %vm282_vm2, %v556_v1, %v279_v8 }
  0x50   : > { %v288_v10 = vsel %vm285_vm3, %v287_v7, %v283_v9 }
  0x51   : > { %473 = vpush %v288_v10 }
  0x82   : > { %s474_s29 = spop %473 }
  0x83   : > { %s290_s8 = smul.f32 %s474_s29, %s866_s28 }
  0x84   : > { %s296_s27 = smul.f32 %s474_s29, %s868_s6 }
  0x85   : > { %v292_v13 = vstv %s290_s8 }
  0x86   : > { %v293_v14 = vmul.f32 %v292_v13, %v291_v11  ;;  %v298_v15 = vstv %s296_s27 }
  0x87   : > { %v299_v16 = vmul.f32 %v298_v15, %v297_v12 }
  0x88   : > { %294 = vst [vmem:[%s264_s10] sm:$0xff] %v293_v14 }
  0x89   : > { %464 = vst [vmem:[%s264_s10 + $0x8] sm:$0xff] %v299_v16 }
  0x8a   : > { %659 = shalt.err (!%p656_p13)
}
  0x8b   : > { %s725_s9 = smov 128   ;;  %s726_s22 = smov 8  }
  0x8c   : > { %483 = dma.vmem_to_hbm [thread:$0]  (%p825_p9), %s318_s0, 256, %s320_s18, %s303_s15, %s725_s9, %s725_s9, %s726_s22  }
  0x8d PF: > { %s334_s21 = sand.u32 1, %s702_s12   ;;  %p929_p0 = scmp.ge.s32.totalorder %s722_s17, 2 }
  0x8e   : > { %s335_s26 = scalar_lea.sflag [#allocation4], %s334_s21 }
  0x8f   : > { %p497_p3 = pnand %p929_p0, %p796_p6 }
  0x91   : > { %p498_p5 = pneg %p497_p3 }
  0x93   : > { %697 = dma.done.wait (%p498_p5), %s335_s26, 256  }
  0x94   : > { %699 = vsyncadd (%p498_p5), %s335_s26, 4294967040  ;;  %s23_s17 = sadd.s32 1, %s722_s17   ;;  %s930_s5 = sld [smem:[#allocation14_spill]] }
  0x95   : > { %p20_p7 = scmp.ge.s32.totalorder %s23_s17, 4   ;;  %s931_s12 = smov %s706_s13 }
  0x96   : > { %s932_s13 = smov %s710_s14  ;;  %s933_s14 = smov %s831_s7 }
  0x97   : > { %s934_s15 = smov %s718_s16  ;;  %22 = sbr.rel (!%p20_p7) target bundleno = 11 (0xb), region = 96 }
  0x9a   : > { %s935_s16 = smov %s930_s5 }
  0x9c   :  { %341 = vsyncpa [#allocation3], 1 }
  0x9d   :  { %343 = vsyncpa [#allocation3 + $0x1], 1 }
  0x9e   :  { %344 = vsyncpa [#allocation8], 1 }
  0x9f   :  { %346 = vsyncpa [#allocation8 + $0x1], 1 }
  0xa0   :  { %347 = vsyncpa [#allocation4], 1 }
  0xa1   :  { %349 = vsyncpa [#allocation4 + $0x1], 1 }
  0xa2   :  { %350 = vsyncpa [#allocation5], 1 }
  0xa3   :  { %352 = vsyncpa [#allocation5 + $0x1], 1 }

</bundles_post_ra>
